<compile_context>
chip_gen: v5e
topology: v5e:2x2
jax: 0.10.0
libtpu: 0.0.40
codegen_flags: <defaults>
</compile_context>

<pallas_src>
import functools

import jax
import jax.numpy as jnp
from jax.experimental import pallas as pl
from jax.experimental.pallas import tpu as pltpu


def _round_up(n, m):
    return ((n + m - 1) // m) * m


# ~0.35us per grid step at ~1.3 TB/s HBM, expressed in bytes of streaming.
_STEP_OVERHEAD_BYTES = 450_000


def _choose_row_tiling(n_rows, row_gran, bytes_per_row, target_rows, max_rows):
    """Pick (tile_rows, n_pad) minimizing streamed bytes + per-step overhead.

    Candidates are multiples of `row_gran`; when the problem is big enough we
    require >=2 grid steps so a 2-TensorCore chip (v7x) can shard the grid.
    """
    n_g = _round_up(n_rows, row_gran)
    hi = max(row_gran, min(_round_up(target_rows, row_gran), n_g, max_rows))
    need_two_steps = n_g >= 2 * row_gran
    best = None  # (cost, tile_rows, n_pad)
    t = row_gran
    while t <= hi:
        n_pad = _round_up(n_rows, t)
        steps = n_pad // t
        if not (need_two_steps and steps < 2):
            cost = n_pad * bytes_per_row + steps * _STEP_OVERHEAD_BYTES
            if best is None or cost < best[0] or (cost == best[0] and t > best[1]):
                best = (cost, t, n_pad)
        t += row_gran
    _, tile_rows, n_pad = best
    return tile_rows, n_pad


def _adapter_kernel(x_ref, wd_ref, bd_ref, wu_ref, bu_ref, o_ref, *, eps, inv_d):
    # LayerNorm statistics in f32, single pass (mean and mean of squares).
    x = x_ref[...].astype(jnp.float32)
    mean = jnp.sum(x, axis=-1, keepdims=True) * inv_d
    mean_sq = jnp.sum(x * x, axis=-1, keepdims=True) * inv_d
    var = jnp.maximum(mean_sq - mean * mean, 0.0)
    xn = (x - mean) * jax.lax.rsqrt(var + eps)

    # down_proj + ReLU. gamma/beta were folded into (wd, bd) by the wrapper.
    # bf16 MXU operands, f32 accumulation.
    down = jnp.dot(xn.astype(jnp.bfloat16), wd_ref[...],
                   preferred_element_type=jnp.float32)
    down = jnp.maximum(down + bd_ref[...], 0.0)

    # TODO(synk): dropout omitted -- module default p=0.0 / eval mode => identity.

    # up_proj (+ bias). The adapter scale is pre-folded into wu/bu.
    up = jnp.dot(down.astype(jnp.bfloat16), wu_ref[...],
                 preferred_element_type=jnp.float32)
    o_ref[...] = (up + bu_ref[...]).astype(o_ref.dtype)


def adapter_forward(x, params, *, scale=1.0, eps=1e-5, target_tile_rows=1024,
                    vmem_limit_bytes=None):
    """x: (B, S, input_dim). Returns (B, S, input_dim) in x.dtype."""
    B, S, D = x.shape
    N = B * S
    x2 = x.reshape(N, D)

    # ---- parameter preparation (all folding happens wrapper-side) ----------
    gamma = params["gamma"].reshape(1, D).astype(jnp.float32)
    beta = params["beta"].reshape(1, D).astype(jnp.float32)
    wd = params["w_down"].astype(jnp.float32)            # (D, Dh), pre-transposed
    bd = params["b_down"].reshape(1, -1).astype(jnp.float32)
    wu = params["w_up"].astype(jnp.float32)               # (Dh, D), pre-transposed
    bu = params["b_up"].reshape(1, D).astype(jnp.float32)

    # Fold LayerNorm affine into the down projection:
    #   (norm*gamma + beta) @ wd + bd == norm @ (diag(gamma) @ wd) + (beta @ wd + bd)
    bd = bd + beta @ wd
    wd = wd * gamma.reshape(D, 1)

    Dh = wd.shape[1]
    Dh_pad = _round_up(Dh, 128)                            # lane-dense bottleneck
    if Dh_pad != Dh:
        wd = jnp.pad(wd, ((0, 0), (0, Dh_pad - Dh)))
        bd = jnp.pad(bd, ((0, 0), (0, Dh_pad - Dh)))
        wu = jnp.pad(wu, ((0, Dh_pad - Dh), (0, 0)))

    scale = float(scale)
    if scale != 1.0:                                       # fold scale into up proj
        wu = wu * scale
        bu = bu * scale

    wd = wd.astype(jnp.bfloat16)                           # bf16 MXU operands
    wu = wu.astype(jnp.bfloat16)

    # ---- row tiling ---------------------------------------------------------
    itemsize = jnp.dtype(x.dtype).itemsize
    row_gran = 8 * max(1, 4 // max(1, itemsize))           # 8 for f32, 16 for bf16
    bytes_per_row = 2 * D * itemsize                       # one read + one write
    # Keep one tile's f32 working set comfortably inside VMEM for large D.
    max_rows = max(row_gran,
                   (6 * 1024 * 1024 // (D * 4)) // row_gran * row_gran)
    tile_rows, N_pad = _choose_row_tiling(N, row_gran, bytes_per_row,
                                          target_tile_rows, max_rows)
    if N_pad != N:
        x2 = jnp.pad(x2, ((0, N_pad - N), (0, 0)))
    grid = (N_pad // tile_rows,)

    # ---- VMEM limit: safe default for v7x, larger on 128 MiB-VMEM parts -----
    if vmem_limit_bytes is None:
        vmem_limit_bytes = 48 * 1024 * 1024
        try:
            cap = getattr(pltpu.get_tpu_info(), "vmem_capacity_bytes", None)
            if cap is not None and int(cap) >= 128 * 1024 * 1024:
                vmem_limit_bytes = 96 * 1024 * 1024
        except Exception:
            pass

    kernel = functools.partial(_adapter_kernel, eps=float(eps), inv_d=1.0 / D)

    out = pl.pallas_call(
        kernel,
        out_shape=jax.ShapeDtypeStruct((N_pad, D), x.dtype),
        grid_spec=pltpu.PrefetchScalarGridSpec(
            num_scalar_prefetch=0,
            grid=grid,
            in_specs=[
                pl.BlockSpec((tile_rows, D), lambda i: (i, 0)),  # x rows (streamed)
                pl.BlockSpec((D, Dh_pad), lambda i: (0, 0)),     # w_down (gamma folded)
                pl.BlockSpec((1, Dh_pad), lambda i: (0, 0)),     # b_down (beta folded)
                pl.BlockSpec((Dh_pad, D), lambda i: (0, 0)),     # w_up (scale folded)
                pl.BlockSpec((1, D), lambda i: (0, 0)),          # b_up (scale folded)
            ],
            out_specs=pl.BlockSpec((tile_rows, D), lambda i: (i, 0)),
        ),
        compiler_params=pltpu.CompilerParams(
            dimension_semantics=("parallel",),
            vmem_limit_bytes=int(vmem_limit_bytes)),
    )(x2, wd, bd, wu, bu)

    return out[:N].reshape(B, S, D)


def init_adapter_params(key, input_dim, output_dim):
    """Deterministic synthetic parameter init (shapes match the PyTorch module)."""
    k1, k2, k3, k4, k5, k6 = jax.random.split(key, 6)
    # Non-trivial LayerNorm affine so the gamma/beta folding path is exercised.
    gamma = 1.0 + 0.1 * jax.random.normal(k5, (1, input_dim), jnp.float32)
    beta = 0.05 * jax.random.normal(k6, (1, input_dim), jnp.float32)
    # Linear weights stored transposed: (in_features, out_features).
    w_down = jax.random.normal(k1, (input_dim, output_dim), jnp.float32) * 0.05
    b_down = jax.random.normal(k2, (1, output_dim), jnp.float32) * 0.01
    w_up = jax.random.normal(k3, (output_dim, input_dim), jnp.float32) * 0.05
    b_up = jax.random.normal(k4, (1, input_dim), jnp.float32) * 0.01
    return dict(gamma=gamma, beta=beta, w_down=w_down, b_down=b_down,
                w_up=w_up, b_up=b_up)


def adapter_reference(x, params, *, scale=1.0, eps=1e-5):
    """Pure-JAX f32 reference for correctness check."""
    x = x.astype(jnp.float32)
    mean = jnp.mean(x, axis=-1, keepdims=True)
    var = jnp.mean((x - mean) ** 2, axis=-1, keepdims=True)
    xn = (x - mean) * jax.lax.rsqrt(var + eps)
    xn = xn * params["gamma"][0] + params["beta"][0]
    down = jnp.maximum(xn @ params["w_down"] + params["b_down"][0], 0.0)
    up = down @ params["w_up"] + params["b_up"][0]
    return up * scale


if __name__ == "__main__":
    key = jax.random.PRNGKey(0)
    kx, kp, kx2, kx3 = jax.random.split(key, 4)

    # Small shapes: batch=2, seq=8, input_dim=32, bottleneck output_dim=8.
    B, S, input_dim, output_dim = 2, 8, 32, 8
    x = jax.random.normal(kx, (B, S, input_dim), jnp.float32)
    params = init_adapter_params(kp, input_dim, output_dim)

    # Test 1: f32, scale=1.0.
    out = adapter_forward(x, params, scale=1.0)
    out = jax.block_until_ready(out)
    ref = adapter_reference(x, params, scale=1.0)
    assert out.shape == (B, S, input_dim)
    assert jnp.allclose(out, ref, atol=1e-2, rtol=1e-2), "mismatch vs reference (test 1)"

    # Test 2: row count not divisible by the row granularity + non-unit scale
    # (exercises row padding + folded scale).
    B2, S2 = 2, 7
    x_b = jax.random.normal(kx2, (B2, S2, input_dim), jnp.float32)
    out2 = adapter_forward(x_b, params, scale=0.5)
    out2 = jax.block_until_ready(out2)
    ref2 = adapter_reference(x_b, params, scale=0.5)
    assert out2.shape == (B2, S2, input_dim)
    assert jnp.allclose(out2, ref2, atol=1e-2, rtol=1e-2), "mismatch vs reference (test 2)"

    # Test 3: bf16 input/output pass-through (halved HBM traffic path).
    x_c = jax.random.normal(kx3, (B, S, input_dim), jnp.float32).astype(jnp.bfloat16)
    out3 = adapter_forward(x_c, params, scale=1.0)
    out3 = jax.block_until_ready(out3)
    assert out3.dtype == jnp.bfloat16 and out3.shape == (B, S, input_dim)
    ref3 = adapter_reference(x_c, params, scale=1.0)
    assert jnp.allclose(out3.astype(jnp.float32), ref3, atol=2e-2, rtol=2e-2), \
        "mismatch vs reference (test 3)"

    print("KERNEL_OK")
</pallas_src>

<mosaic_0001>
module attributes {stable_mosaic.version = 11 : i64} {
  func.func @_adapter_kernel(%arg0: i32, %arg1: memref<8x32xf32, #tpu.memory_space<vmem>>, %arg2: memref<32x128xbf16, #tpu.memory_space<vmem>>, %arg3: memref<1x128xf32, #tpu.memory_space<vmem>>, %arg4: memref<128x32xbf16, #tpu.memory_space<vmem>>, %arg5: memref<1x32xf32, #tpu.memory_space<vmem>>, %arg6: memref<8x32xf32, #tpu.memory_space<vmem>>) attributes {dimension_semantics = [#tpu.dimension_semantics<parallel>], iteration_bounds = array<i64: 2>, scalar_prefetch = 0 : i64, scratch_operands = 0 : i64, tpu.core_type = #tpu.core_type<tc>, window_params = [{transform_indices = @transform_0, window_bounds = array<i64: 8, 32>}, {pipeline_mode = #tpu.pipeline_mode<synchronous>, transform_indices = @transform_1, window_bounds = array<i64: 32, 128>}, {pipeline_mode = #tpu.pipeline_mode<synchronous>, transform_indices = @transform_2, window_bounds = array<i64: 1, 128>}, {pipeline_mode = #tpu.pipeline_mode<synchronous>, transform_indices = @transform_3, window_bounds = array<i64: 128, 32>}, {pipeline_mode = #tpu.pipeline_mode<synchronous>, transform_indices = @transform_4, window_bounds = array<i64: 1, 32>}, {transform_indices = @transform_5, window_bounds = array<i64: 8, 32>}]} {
    %c0 = arith.constant 0 : index
    %c0_0 = arith.constant 0 : index
    %0 = vector.load %arg1[%c0, %c0_0] : memref<8x32xf32, #tpu.memory_space<vmem>>, vector<8x32xf32>
    %cst = arith.constant dense<0.000000e+00> : vector<8xf32>
    %1 = vector.multi_reduction <add>, %0, %cst [1] : vector<8x32xf32> to vector<8xf32>
    %2 = vector.shape_cast %1 : vector<8xf32> to vector<8x1xf32>
    %cst_1 = arith.constant 3.125000e-02 : f32
    %3 = vector.broadcast %cst_1 : f32 to vector<8x1xf32>
    %4 = arith.mulf %2, %3 : vector<8x1xf32>
    %5 = arith.mulf %0, %0 : vector<8x32xf32>
    %cst_2 = arith.constant dense<0.000000e+00> : vector<8xf32>
    %6 = vector.multi_reduction <add>, %5, %cst_2 [1] : vector<8x32xf32> to vector<8xf32>
    %7 = vector.shape_cast %6 : vector<8xf32> to vector<8x1xf32>
    %cst_3 = arith.constant 3.125000e-02 : f32
    %8 = vector.broadcast %cst_3 : f32 to vector<8x1xf32>
    %9 = arith.mulf %7, %8 : vector<8x1xf32>
    %10 = arith.mulf %4, %4 : vector<8x1xf32>
    %11 = arith.subf %9, %10 : vector<8x1xf32>
    %cst_4 = arith.constant 0.000000e+00 : f32
    %12 = vector.broadcast %cst_4 : f32 to vector<8x1xf32>
    %13 = arith.maximumf %11, %12 : vector<8x1xf32>
    %14 = vector.broadcast %4 : vector<8x1xf32> to vector<8x32xf32>
    %15 = arith.subf %0, %14 : vector<8x32xf32>
    %cst_5 = arith.constant 9.99999974E-6 : f32
    %16 = vector.broadcast %cst_5 : f32 to vector<8x1xf32>
    %17 = arith.addf %13, %16 : vector<8x1xf32>
    %18 = math.rsqrt %17 : vector<8x1xf32>
    %19 = vector.broadcast %18 : vector<8x1xf32> to vector<8x32xf32>
    %20 = arith.mulf %15, %19 : vector<8x32xf32>
    %21 = arith.truncf %20 : vector<8x32xf32> to vector<8x32xbf16>
    %c0_6 = arith.constant 0 : index
    %c0_7 = arith.constant 0 : index
    %22 = vector.load %arg2[%c0_6, %c0_7] : memref<32x128xbf16, #tpu.memory_space<vmem>>, vector<32x128xbf16>
    %cst_8 = arith.constant dense<0.000000e+00> : vector<8x128xf32>
    %23 = tpu.matmul %21, %22, %cst_8 {dimension_numbers = #tpu.dot_dimension_numbers<[1], [0], [0], [1], [0, 0, 1, 1], [], []>} : vector<8x32xbf16>, vector<32x128xbf16>, vector<8x128xf32> -> vector<8x128xf32>
    %c0_9 = arith.constant 0 : index
    %c0_10 = arith.constant 0 : index
    %24 = vector.load %arg3[%c0_9, %c0_10] : memref<1x128xf32, #tpu.memory_space<vmem>>, vector<1x128xf32>
    %25 = vector.broadcast %24 : vector<1x128xf32> to vector<8x128xf32>
    %26 = arith.addf %23, %25 : vector<8x128xf32>
    %cst_11 = arith.constant 0.000000e+00 : f32
    %27 = vector.broadcast %cst_11 : f32 to vector<8x128xf32>
    %28 = arith.maximumf %26, %27 : vector<8x128xf32>
    %29 = arith.truncf %28 : vector<8x128xf32> to vector<8x128xbf16>
    %c0_12 = arith.constant 0 : index
    %c0_13 = arith.constant 0 : index
    %30 = vector.load %arg4[%c0_12, %c0_13] : memref<128x32xbf16, #tpu.memory_space<vmem>>, vector<128x32xbf16>
    %cst_14 = arith.constant dense<0.000000e+00> : vector<8x32xf32>
    %31 = tpu.matmul %29, %30, %cst_14 {dimension_numbers = #tpu.dot_dimension_numbers<[1], [0], [0], [1], [0, 0, 1, 1], [], []>} : vector<8x128xbf16>, vector<128x32xbf16>, vector<8x32xf32> -> vector<8x32xf32>
    %c0_15 = arith.constant 0 : index
    %c0_16 = arith.constant 0 : index
    %32 = vector.load %arg5[%c0_15, %c0_16] : memref<1x32xf32, #tpu.memory_space<vmem>>, vector<1x32xf32>
    %33 = vector.broadcast %32 : vector<1x32xf32> to vector<8x32xf32>
    %34 = arith.addf %31, %33 : vector<8x32xf32>
    %c0_17 = arith.constant 0 : index
    %c0_18 = arith.constant 0 : index
    %35 = vector.load %arg6[%c0_17, %c0_18] : memref<8x32xf32, #tpu.memory_space<vmem>>, vector<8x32xf32>
    tpu.vector_store %arg6[%c0_17, %c0_18], %34 {strides = array<i32>} : memref<8x32xf32, #tpu.memory_space<vmem>>, vector<8x32xf32>,
    return
  }
  func.func @transform_0(%arg0: i32) -> (i32, i32) {
    %c0_i32 = arith.constant 0 : i32
    %c0_i32_0 = arith.constant 0 : i32
    return %arg0, %c0_i32 : i32, i32
  }
  func.func @transform_1(%arg0: i32) -> (i32, i32) {
    %c0_i32 = arith.constant 0 : i32
    %c0_i32_0 = arith.constant 0 : i32
    %c0_i32_1 = arith.constant 0 : i32
    return %c0_i32, %c0_i32_0 : i32, i32
  }
  func.func @transform_2(%arg0: i32) -> (i32, i32) {
    %c0_i32 = arith.constant 0 : i32
    %c0_i32_0 = arith.constant 0 : i32
    %c0_i32_1 = arith.constant 0 : i32
    return %c0_i32, %c0_i32_0 : i32, i32
  }
  func.func @transform_3(%arg0: i32) -> (i32, i32) {
    %c0_i32 = arith.constant 0 : i32
    %c0_i32_0 = arith.constant 0 : i32
    %c0_i32_1 = arith.constant 0 : i32
    return %c0_i32, %c0_i32_0 : i32, i32
  }
  func.func @transform_4(%arg0: i32) -> (i32, i32) {
    %c0_i32 = arith.constant 0 : i32
    %c0_i32_0 = arith.constant 0 : i32
    %c0_i32_1 = arith.constant 0 : i32
    return %c0_i32, %c0_i32_0 : i32, i32
  }
  func.func @transform_5(%arg0: i32) -> (i32, i32) {
    %c0_i32 = arith.constant 0 : i32
    %c0_i32_0 = arith.constant 0 : i32
    return %arg0, %c0_i32 : i32, i32
  }
}

</mosaic_0001>

<bundles_post_ra>
// kernel: tpu_custom_call.1
= control target key start
LH: loop header
LB: loop body
LE: loop exit
PB: predicated region body
PF: predicated region fallthrough
CT: control target
= control target key end

     0   :  { %10 = vsyncpa [#allocation3], 0  ;;  %s767_s0 = inlined_call_operand.vmem [shape: f32[16,32], index: 0, kind: input, shape index: {}]   ;;  %s768_s1 = inlined_call_operand.vmem [shape: bf16[32,128], index: 1, kind: input, shape index: {}]   ;;  %s769_s2 = inlined_call_operand.vmem [shape: f32[1,128], index: 2, kind: input, shape index: {}]   ;;  %s770_s3 = inlined_call_operand.vmem [shape: bf16[128,32], index: 3, kind: input, shape index: {}]   ;;  %s771_s4 = inlined_call_operand.vmem [shape: f32[1,32], index: 4, kind: input, shape index: {}]   ;;  %s772_s5 = inlined_call_operand.hbm [shape: f32[16,32], index: 5, kind: output, shape index: {}]  }
   0x1   :  { %12 = vsyncpa [#allocation3 + $0x1], 0  ;;  %s642_s18 = smov 0   ;;  %s644_s19 = smov 0  }
   0x2   :  { %s646_s20 = smov 0   ;;  %s648_s21 = smov 0  }
   0x3 LB: > { %s663_s22 = sadd.s32 4294967295, %s610_s21   ;;  %s444_s23 = sadd.s32 4294967294, %s610_s21   ;;  %s610_s21 = sphi %s648_s21, %s778_s21   ;;  %s606_s20 = sphi %s646_s20, %s777_s20   ;;  %s602_s19 = sphi %s644_s19, %s776_s19   ;;  %s598_s18 = sphi %s642_s18, %s775_s18  }
   0x4   : > { %s667_s24 = sadd.s32 1, %s610_s21   ;;  %s135_s25 = sadd.s32 1, %s606_s20 }
   0x5   : > { %s132_s26 = ssub.s32 %s610_s21, %s667_s24  ;;  %p145_p0 = scmp.ne.s32.totalorder %s606_s20, %s602_s19 }
   0x6   : > { %p133_p1 = scmp.eq.s32.totalorder %s132_s26, 0  ;;  %p146_p2 = scmp.eq.s32.totalorder %s663_s22, 1 }
   0x7   : > { %p151_p3 = scmp.ne.s32.totalorder %s602_s19, %s598_s18  ;;  %p152_p4 = scmp.eq.s32.totalorder %s444_s23, 1 }
   0x8   : > { %s678_s27 = scalar_select %p133_p1, %s606_s20, %s135_s25  }
   0x9   : > { %p680_p5 = por %p146_p2, %p145_p0  ;;  %p684_p6 = por %p152_p4, %p151_p3 }
   0xa   : > { %p447_p7 = scmp.ge.s32.totalorder %s610_s21, 1  ;;  %p189_p8 = scmp.lt.s32.totalorder %s610_s21, 3 }
   0xc   : > { %p190_p9 = pnand %p447_p7, %p189_p8 }
   0xd   : > { %p216_p10 = scmp.lt.s32.totalorder (!%p190_p9), %s663_s22, 1  ;;  %s213_s16 = sand.u32 (!%p190_p9), 1, %s602_s19  }
   0xe   : > { %193 = sbr.rel (%p190_p9) target bundleno = 445 (0x1bd), region = 40  ;;  %s492_s17 = sshll.u32 (!%p190_p9), %s663_s22, 3 }
   0xf   : > { %s448_s23 = sshll.u32 (!%p190_p9), %s213_s16, 3  ;;  %s568_s15 = scalar_lea.hbm (!%p190_p9), %s772_s5, 16 }
  0x10   : > { %s215_s8 = scalar_lea.vmem (!%p190_p9), [#allocation2], %s448_s23 }
  0x13   : > { %s217_s30 = scalar_select %p216_p10, %s663_s22, 1  ;;  %vm222_vm0 = vcmask 261120   ;;  %v496_v4 = vld [vmem:[%s768_s1 + $0x8] sm:$0xff]  ;;  %v495_v6 = vld [vmem:[%s768_s1] sm:$0xff]  ;;  %v504_v8 = vld [vmem:[%s770_s3 + $0x38] sm:$0xff] }
  0x14   : > { %278 = vmatpush.bf16.msra.mxu0 %v496_v4  ;;  %355 = vmatpush.bf16.msra.mxu1 %v504_v8  ;;  %v503_v12 = vld [vmem:[%s770_s3 + $0x30] sm:$0xff]  ;;  %v502_v15 = vld [vmem:[%s770_s3 + $0x28] sm:$0xff]  ;;  %v501_v17 = vld [vmem:[%s770_s3 + $0x20] sm:$0xff]  ;;  %s370_s22 = scalar_lea.sflag [#allocation3], %s213_s16 }
  0x15   : > { %s449_s6 = sshll.u32 %s217_s30, 3  ;;  %v500_v18 = vld [vmem:[%s770_s3 + $0x18] sm:$0xff]  ;;  %v499_v21 = vld [vmem:[%s770_s3 + $0x10] sm:$0xff]  ;;  %v498_v30 = vld [vmem:[%s770_s3 + $0x8] sm:$0xff]  ;;  %s380_s30 = scalar_lea.hbm %s772_s5, %s492_s17 }
  0x16   : > { %s219_s9 = scalar_lea.vmem %s767_s0, %s449_s6  ;;  %v497_v31 = vld [vmem:[%s770_s3] sm:$0xff]  ;;  %s384_s10 = sshll.u32 %s380_s30, 4  ;;  %s385_s10 = int_to_ptr.hbm [resolvable:$true] %s384_s10 }
  0x17   : > { %v221_v0 = vld [vmem:[%s219_s9] sm:$0xff]  ;;  %s382_s9 = sshll.u32 %s215_s8, 4  ;;  %s562_s11 = sshra.s32 %s385_s10, 4  ;;  %s383_s9 = int_to_ptr.vmem [resolvable:$true] %s382_s9  ;;  %s563_s11 = int_to_ptr.hbm [resolvable:$true] %s562_s11 }
  0x18   : > { %v223_v1 = vsel %vm222_vm0, %v221_v0, 0.0  ;;  %v227_v2 = vmul.f32 %v221_v0, %v221_v0  ;;  %279 = vmatpush.bf16.msra.mxu0 %v495_v6  ;;  %356 = vmatpush.bf16.msra.mxu1 %v503_v12  ;;  %v544_v32 = vld [vmem:[%s769_s2] ss:$0 sm:$0xff]  ;;  %s564_s12 = scalar_lea.hbm %s563_s11, 8  ;;  %p569_p0 = scmp.lt.s32.totalorder %s563_s11, %s772_s5 }
  0x19   : > { %224 = vadd.xlane.f32.xlu0 %v223_v1  ;;  %v545_v38 = vld [vmem:[%s771_s4] ss:$0 sm:$0xff]  ;;  %p565_p11 = scmp.ne.s32.totalorder %s563_s11, %s564_s12  ;;  %p570_p1 = scmp.lt.s32.totalorder %s568_s15, %s564_s12 }
  0x1a   : > { %v228_v3 = vsel %vm222_vm0, %v227_v2, 0.0 }
  0x1b   : > { %p566_p12 = pnand %p565_p11, %p680_p5  ;;  %p571_p2 = por %p570_p1, %p569_p0 }
  0x1c   : > { %357 = vmatpush.bf16.msra.mxu1 %v502_v15 }
  0x1d   : > { %p567_p13 = pneg %p566_p12 }
  0x1f   : > { %p572_p3 = pnand %p571_p2, %p567_p13 }
  0x20   : > { %358 = vmatpush.bf16.msra.mxu1 %v501_v17 }
  0x21   : > { %229 = vadd.xlane.f32.xlu0 %v228_v3 }
  0x24   : > { %359 = vmatpush.bf16.msra.mxu1 %v500_v18 }
  0x28   : > { %360 = vmatpush.bf16.msra.mxu1 %v499_v21 }
  0x2c   : > { %361 = vmatpush.bf16.msra.mxu1 %v498_v30 }
  0x30   : > { %362 = vmatpush.bf16.msra.mxu1 %v497_v31 }
  0x8c   : > { %v225_v5 = vpop.xlane.xlu0 %224 }
  0x8d   : > { %v226_v7 = vmul.f32 0.03125, %v225_v5 }
  0x8f   : > { %v232_v10 = vmul.f32 %v226_v7, %v226_v7  ;;  %v235_v26 = vsub.f32 %v221_v0, %v226_v7 }
  0x94   : > { %v230_v9 = vpop.xlane.xlu0 %229 }
  0x95   : > { %v231_v11 = vmul.f32 0.03125, %v230_v9 }
  0x97   : > { %v233_v13 = vsub.f32 %v231_v11, %v232_v10 }
  0x99   : > { %v234_v14 = vmax.f32 %v233_v13, 0.0 }
  0x9b   : > { %v236_v16 = vadd.f32 1e-05, %v234_v14 }
  0x9d   : > { %546 = vrsqrt.f32 %v236_v16  ;;  %vm243_vm2 = vweird.f32 %v236_v16 }
  0xa3   : > { %v547_v19 = vpop.eup %546 }
  0xa4   : > { %v238_v20 = vmul.f32 %v547_v19, %v236_v16  ;;  %vm244_vm1 = vweird.f32 %v547_v19 }
  0xa5   : > { %vm245_vm3 = vmor %vm243_vm2, %vm244_vm1 }
  0xa6   : > { %v239_v22 = vmul.f32 %v547_v19, %v238_v20 }
  0xa8   : > { %v240_v23 = vmul.f32 0.5, %v239_v22 }
  0xaa   : > { %v241_v24 = vsub.f32 1.5, %v240_v23 }
  0xac   : > { %v242_v25 = vmul.f32 %v547_v19, %v241_v24 }
  0xae   : > { %v246_v27 = vsel %vm245_vm3, %v547_v19, %v242_v25 }
  0xaf   : > { %v247_v28 = vmul.f32 %v246_v27, %v235_v26 }
  0xb1   : > { %v248_v29 = vpack.c.bf16 %v247_v28, %v247_v28 }
  0xb3   : > { %458 = vmatmul.msk.bf16.vlgmr.msra.gmra.mxu0 %vm222_vm0, %v248_v29 }
 0x130   : > { %v281_v33 = vpop.f32.mrf.mxu0 }
 0x131   : > { %v282_v34 = vadd.f32 %v544_v32, %v281_v33 }
 0x133   : > { %v285_v35 = vmax.f32 %v282_v34, 0.0 }
 0x135   : > { %v286_v36 = vpack.c.bf16 %v285_v35, %v285_v35 }
 0x137   : > { %363 = vmatmul.bf16.vlgmr.msra.gmra.mxu1 %v286_v36 }
 0x138   : > { %v283_v37 = vpop.f32.mrf.mxu0 }
 0x1b4   : > { %v364_v39 = vpop.f32.mrf.mxu1 }
 0x1b5   : > { %v365_v40 = vadd.f32 %v545_v38, %v364_v39 }
 0x1b7   : > { %368 = vst.msk [vmem:[%s215_s8] sm:$0xff] %vm222_vm0, %v365_v40 }
 0x1b8   : > { %575 = shalt.err (!%p572_p3)
}
 0x1b9   : > { %505 = dma.vmem_to_hbm [thread:$0]  (%p680_p5), %s383_s9, 128, %s385_s10, %s370_s22  }
 0x1bc   : > { %v366_v41 = vpop.f32.mrf.mxu1 }
 0x1bd PF: > { %p511_p4 = scmp.ge.s32.totalorder %s610_s21, 2  ;;  %s396_s16 = sand.u32 1, %s598_s18  }
 0x1be   : > { %s397_s25 = scalar_lea.sflag [#allocation3], %s396_s16 }
 0x1bf   : > { %p508_p7 = pnand %p511_p4, %p684_p6 }
 0x1c1   : > { %p509_p8 = pneg %p508_p7 }
 0x1c3   : > { %593 = dma.done.wait (%p509_p8), %s397_s25, 128  }
 0x1c4   : > { %595 = vsyncadd (%p509_p8), %s397_s25, 4294967168  ;;  %p15_p9 = scmp.ge.s32.totalorder %s667_s24, 4   ;;  %s775_s18 = smov %s602_s19 }
 0x1c5   : > { %s776_s19 = smov %s606_s20  ;;  %s777_s20 = smov %s678_s27 }
 0x1c6   : > { %s778_s21 = smov %s667_s24  ;;  %17 = sbr.rel (!%p15_p9) target bundleno = 3 (0x3), region = 75 }
 0x1cb   :  { %403 = vsyncpa [#allocation3], 1 }
 0x1cc   :  { %405 = vsyncpa [#allocation3 + $0x1], 1 }

</bundles_post_ra>
